<compile_context>
chip_gen: v5e
topology: v5e:2x2
jax: 0.10.0
libtpu: 0.0.40
codegen_flags: <defaults>
</compile_context>

<pallas_src>
import functools

import jax
import jax.numpy as jnp
from jax.experimental import pallas as pl
from jax.experimental.pallas import tpu as pltpu

_SUBLANE = 8
_MAX_BATCH_TILE = 2048           # keeps per-tile VMEM well under every chip's limit
_VMEM_LIMIT_BYTES = 32 * 1024 * 1024


def _round_up(x, m):
    return (x + m - 1) // m * m


def _choose_batch_tile(batch):
    """Few, fat tiles (fixed per-step overhead dominates this ~25 KFLOP/row MLP),
    but >= 2 tiles when the batch allows so v7x's two TensorCores both get work."""
    half = _round_up(pl.cdiv(batch, 2), _SUBLANE)
    return max(min(half, _MAX_BATCH_TILE), _SUBLANE)


def _actor_kernel(x_ref, w1_ref, b1_ref, w2_ref, b2_ref,
                  w3_ref, b3_ref, w4_ref, b4_ref, out_ref, *, max_action):
    # Cast the streamed activation block to the matmul dtype in-kernel (avoids
    # a wrapper-side full HBM pass over x).  MXU accumulation and all
    # elementwise math (bias, ReLU, tanh) stay f32 on every generation.
    x = x_ref[...].astype(w1_ref.dtype)
    h = jnp.dot(x, w1_ref[...], preferred_element_type=jnp.float32)
    h = jnp.maximum(h + b1_ref[...], 0.0).astype(w2_ref.dtype)

    h = jnp.dot(h, w2_ref[...], preferred_element_type=jnp.float32)
    h = jnp.maximum(h + b2_ref[...], 0.0).astype(w3_ref.dtype)

    h = jnp.dot(h, w3_ref[...], preferred_element_type=jnp.float32)
    h = jnp.maximum(h + b3_ref[...], 0.0).astype(w4_ref.dtype)

    logits = jnp.dot(h, w4_ref[...], preferred_element_type=jnp.float32)
    out_ref[...] = (max_action * jnp.tanh(logits + b4_ref[...])).astype(out_ref.dtype)


def prepare_actor_params(params, compute_dtype=jnp.bfloat16):
    """One-time parameter prep, hoisted out of the forward pass.

    Weights (MXU operands) are cast to `compute_dtype` (bf16 is the native MXU
    operand dtype on v5e/v6e/v7x and halves weight DMA bytes); biases stay f32
    so the elementwise path is f32-safe everywhere.  Use jnp.float32 for an
    exact path."""
    prepped = dict(params)
    for k in ("w1", "w2", "w3", "w4"):
        prepped[k] = params[k].astype(compute_dtype)
    return prepped


def _cost_estimate(rows, obs_dim, act_dim, arrays):
    flops = 2 * rows * (obs_dim * 128 + 128 * 64 + 64 * 32 + 32 * act_dim)
    bytes_accessed = sum(int(a.size) * a.dtype.itemsize for a in arrays)
    bytes_accessed += rows * act_dim * 4  # f32 output writeback
    return pl.CostEstimate(flops=flops,
                           transcendentals=rows * act_dim,
                           bytes_accessed=bytes_accessed)


def actor_forward(x, params, max_action):
    """Single-agent Actor forward.

    x: (batch, obs_dim) f32.  params: 'w{i}' of shape (in, out) (optionally
    pre-cast via prepare_actor_params) and 'b{i}' of shape (1, out) f32.
    Returns (batch, act_dim) f32."""
    batch, obs_dim = x.shape
    act_dim = params["w4"].shape[-1]

    tb = _choose_batch_tile(batch)
    # Ragged last tile: OOB rows read unspecified data, OOB stores discarded.
    n_tiles = pl.cdiv(batch, tb)

    def x_map(i):
        return (i, 0)

    def const_map(i):      # weights/biases: DMA'd once, VMEM-resident across tiles
        return (0, 0)

    w1, w2, w3, w4 = params["w1"], params["w2"], params["w3"], params["w4"]
    b1, b2, b3, b4 = params["b1"], params["b2"], params["b3"], params["b4"]
    operands = (x, w1, b1, w2, b2, w3, b3, w4, b4)

    in_specs = [pl.BlockSpec((tb, obs_dim), x_map)]
    for p in operands[1:]:
        in_specs.append(pl.BlockSpec(p.shape, const_map))
    out_spec = pl.BlockSpec((tb, act_dim), x_map)

    return pl.pallas_call(
        functools.partial(_actor_kernel, max_action=float(max_action)),
        out_shape=jax.ShapeDtypeStruct((batch, act_dim), jnp.float32),
        grid=(n_tiles,),
        in_specs=in_specs,
        out_specs=out_spec,
        compiler_params=pltpu.CompilerParams(
            dimension_semantics=("parallel",),
            vmem_limit_bytes=_VMEM_LIMIT_BYTES),
        cost_estimate=_cost_estimate(batch, obs_dim, act_dim, operands),
    )(*operands)


def actor_forward_stacked(x, params, max_action):
    """Multi-agent (MADDPG) batched forward: all agents in one launch.

    x: (n_agents, batch, obs_dim).  params: 'w{i}' of shape (n_agents, in, out),
    'b{i}' of shape (n_agents, 1, out).  Valid when agents share obs/act dims.
    The leading agent axis is a "parallel" grid dimension; the agent dim is
    squeezed (None) from every block so the same kernel body is reused."""
    n_agents, batch, obs_dim = x.shape
    act_dim = params["w4"].shape[-1]

    tb = _choose_batch_tile(batch)
    n_tiles = pl.cdiv(batch, tb)

    def x_map(a, i):
        return (a, i, 0)

    def const_map(a, i):
        return (a, 0, 0)

    w1, w2, w3, w4 = params["w1"], params["w2"], params["w3"], params["w4"]
    b1, b2, b3, b4 = params["b1"], params["b2"], params["b3"], params["b4"]
    operands = (x, w1, b1, w2, b2, w3, b3, w4, b4)

    in_specs = [pl.BlockSpec((None, tb, obs_dim), x_map)]
    for p in operands[1:]:
        in_specs.append(pl.BlockSpec((None,) + p.shape[1:], const_map))
    out_spec = pl.BlockSpec((None, tb, act_dim), x_map)

    return pl.pallas_call(
        functools.partial(_actor_kernel, max_action=float(max_action)),
        out_shape=jax.ShapeDtypeStruct((n_agents, batch, act_dim), jnp.float32),
        grid=(n_agents, n_tiles),
        in_specs=in_specs,
        out_specs=out_spec,
        compiler_params=pltpu.CompilerParams(
            dimension_semantics=("parallel", "parallel"),
            vmem_limit_bytes=_VMEM_LIMIT_BYTES),
        cost_estimate=_cost_estimate(n_agents * batch, obs_dim, act_dim, operands),
    )(*operands)


def init_actor_params(key, obs_dim, act_dim):
    """Deterministic synthetic parameters (PyTorch nn.Linear-style uniform init)."""
    dims = [(obs_dim, 128), (128, 64), (64, 32), (32, act_dim)]
    params = {}
    for i, (fan_in, fan_out) in enumerate(dims, start=1):
        key, kw, kb = jax.random.split(key, 3)
        bound = 1.0 / jnp.sqrt(fan_in)
        params[f"w{i}"] = jax.random.uniform(
            kw, (fan_in, fan_out), jnp.float32, -bound, bound)
        params[f"b{i}"] = jax.random.uniform(
            kb, (1, fan_out), jnp.float32, -bound, bound)
    return params


def actor_reference(x, params, max_action):
    """Plain-JAX f32 reference for correctness checking."""
    h = jnp.maximum(x @ params["w1"] + params["b1"], 0.0)
    h = jnp.maximum(h @ params["w2"] + params["b2"], 0.0)
    h = jnp.maximum(h @ params["w3"] + params["b3"], 0.0)
    return max_action * jnp.tanh(h @ params["w4"] + params["b4"])


if __name__ == "__main__":
    key = jax.random.PRNGKey(0)

    batch = 300        # non-multiple of the tile -> exercises the ragged last tile
    obs_dim = 16       # args.obs_shape[agent_id]
    act_dim = 8        # args.action_shape[agent_id]
    max_action = 1.0   # args.high_action

    key, kx, kp = jax.random.split(key, 3)
    x = jax.random.normal(kx, (batch, obs_dim), jnp.float32)
    params = init_actor_params(kp, obs_dim, act_dim)

    ref = actor_reference(x, params, max_action)

    # f32 matmul path (exact vs reference).
    params_f32 = prepare_actor_params(params, compute_dtype=jnp.float32)
    action = jax.block_until_ready(actor_forward(x, params_f32, max_action))
    assert action.shape == (batch, act_dim)
    assert jnp.allclose(action, ref, atol=1e-5, rtol=1e-5), "f32 mismatch vs reference"

    # bf16 MXU path (native operand dtype on v5e/v6e/v7x; f32 accumulate/elementwise).
    params_bf16 = prepare_actor_params(params, compute_dtype=jnp.bfloat16)
    action_bf16 = jax.block_until_ready(actor_forward(x, params_bf16, max_action))
    assert action_bf16.shape == (batch, act_dim)
    assert jnp.allclose(action_bf16, ref, atol=3e-2, rtol=3e-2), "bf16 mismatch vs reference"

    # Stacked multi-agent call: one launch for all MADDPG agents.
    n_agents = 3
    key, kxs, *agent_keys = jax.random.split(key, n_agents + 2)
    agent_params = [init_actor_params(k, obs_dim, act_dim) for k in agent_keys]
    stacked = {k: jnp.stack([p[k] for p in agent_params]) for k in agent_params[0]}
    xs = jax.random.normal(kxs, (n_agents, batch, obs_dim), jnp.float32)
    ref_stacked = jnp.stack([actor_reference(xs[a], agent_params[a], max_action)
                             for a in range(n_agents)])
    stacked_f32 = prepare_actor_params(stacked, compute_dtype=jnp.float32)
    act_stacked = jax.block_until_ready(
        actor_forward_stacked(xs, stacked_f32, max_action))
    assert act_stacked.shape == (n_agents, batch, act_dim)
    assert jnp.allclose(act_stacked, ref_stacked, atol=1e-5, rtol=1e-5), \
        "stacked mismatch vs reference"

    print("KERNEL_OK")
</pallas_src>

<mosaic_0001>
module attributes {stable_mosaic.version = 11 : i64} {
  func.func @_actor_kernel(%arg0: i32, %arg1: memref<152x16xf32, #tpu.memory_space<vmem>>, %arg2: memref<16x128xf32, #tpu.memory_space<vmem>>, %arg3: memref<1x128xf32, #tpu.memory_space<vmem>>, %arg4: memref<128x64xf32, #tpu.memory_space<vmem>>, %arg5: memref<1x64xf32, #tpu.memory_space<vmem>>, %arg6: memref<64x32xf32, #tpu.memory_space<vmem>>, %arg7: memref<1x32xf32, #tpu.memory_space<vmem>>, %arg8: memref<32x8xf32, #tpu.memory_space<vmem>>, %arg9: memref<1x8xf32, #tpu.memory_space<vmem>>, %arg10: memref<152x8xf32, #tpu.memory_space<vmem>>) attributes {dimension_semantics = [#tpu.dimension_semantics<parallel>], iteration_bounds = array<i64: 2>, scalar_prefetch = 0 : i64, scratch_operands = 0 : i64, tpu.core_type = #tpu.core_type<tc>, window_params = [{transform_indices = @transform_0, window_bounds = array<i64: 152, 16>}, {pipeline_mode = #tpu.pipeline_mode<synchronous>, transform_indices = @transform_1, window_bounds = array<i64: 16, 128>}, {pipeline_mode = #tpu.pipeline_mode<synchronous>, transform_indices = @transform_2, window_bounds = array<i64: 1, 128>}, {pipeline_mode = #tpu.pipeline_mode<synchronous>, transform_indices = @transform_3, window_bounds = array<i64: 128, 64>}, {pipeline_mode = #tpu.pipeline_mode<synchronous>, transform_indices = @transform_4, window_bounds = array<i64: 1, 64>}, {pipeline_mode = #tpu.pipeline_mode<synchronous>, transform_indices = @transform_5, window_bounds = array<i64: 64, 32>}, {pipeline_mode = #tpu.pipeline_mode<synchronous>, transform_indices = @transform_6, window_bounds = array<i64: 1, 32>}, {pipeline_mode = #tpu.pipeline_mode<synchronous>, transform_indices = @transform_7, window_bounds = array<i64: 32, 8>}, {pipeline_mode = #tpu.pipeline_mode<synchronous>, transform_indices = @transform_8, window_bounds = array<i64: 1, 8>}, {transform_indices = @transform_9, window_bounds = array<i64: 152, 8>}]} {
    %c0 = arith.constant 0 : index
    %c0_0 = arith.constant 0 : index
    %0 = vector.load %arg1[%c0, %c0_0] : memref<152x16xf32, #tpu.memory_space<vmem>>, vector<152x16xf32>
    %c0_1 = arith.constant 0 : index
    %c0_2 = arith.constant 0 : index
    %1 = vector.load %arg2[%c0_1, %c0_2] : memref<16x128xf32, #tpu.memory_space<vmem>>, vector<16x128xf32>
    %cst = arith.constant dense<0.000000e+00> : vector<152x128xf32>
    %2 = tpu.matmul %0, %1, %cst {dimension_numbers = #tpu.dot_dimension_numbers<[1], [0], [0], [1], [0, 0, 1, 1], [], []>} : vector<152x16xf32>, vector<16x128xf32>, vector<152x128xf32> -> vector<152x128xf32>
    %c0_3 = arith.constant 0 : index
    %c0_4 = arith.constant 0 : index
    %3 = vector.load %arg3[%c0_3, %c0_4] : memref<1x128xf32, #tpu.memory_space<vmem>>, vector<1x128xf32>
    %4 = vector.broadcast %3 : vector<1x128xf32> to vector<152x128xf32>
    %5 = arith.addf %2, %4 : vector<152x128xf32>
    %cst_5 = arith.constant 0.000000e+00 : f32
    %6 = vector.broadcast %cst_5 : f32 to vector<152x128xf32>
    %7 = arith.maximumf %5, %6 : vector<152x128xf32>
    %c0_6 = arith.constant 0 : index
    %c0_7 = arith.constant 0 : index
    %8 = vector.load %arg4[%c0_6, %c0_7] : memref<128x64xf32, #tpu.memory_space<vmem>>, vector<128x64xf32>
    %cst_8 = arith.constant dense<0.000000e+00> : vector<152x64xf32>
    %9 = tpu.matmul %7, %8, %cst_8 {dimension_numbers = #tpu.dot_dimension_numbers<[1], [0], [0], [1], [0, 0, 1, 1], [], []>} : vector<152x128xf32>, vector<128x64xf32>, vector<152x64xf32> -> vector<152x64xf32>
    %c0_9 = arith.constant 0 : index
    %c0_10 = arith.constant 0 : index
    %10 = vector.load %arg5[%c0_9, %c0_10] : memref<1x64xf32, #tpu.memory_space<vmem>>, vector<1x64xf32>
    %11 = vector.broadcast %10 : vector<1x64xf32> to vector<152x64xf32>
    %12 = arith.addf %9, %11 : vector<152x64xf32>
    %cst_11 = arith.constant 0.000000e+00 : f32
    %13 = vector.broadcast %cst_11 : f32 to vector<152x64xf32>
    %14 = arith.maximumf %12, %13 : vector<152x64xf32>
    %c0_12 = arith.constant 0 : index
    %c0_13 = arith.constant 0 : index
    %15 = vector.load %arg6[%c0_12, %c0_13] : memref<64x32xf32, #tpu.memory_space<vmem>>, vector<64x32xf32>
    %cst_14 = arith.constant dense<0.000000e+00> : vector<152x32xf32>
    %16 = tpu.matmul %14, %15, %cst_14 {dimension_numbers = #tpu.dot_dimension_numbers<[1], [0], [0], [1], [0, 0, 1, 1], [], []>} : vector<152x64xf32>, vector<64x32xf32>, vector<152x32xf32> -> vector<152x32xf32>
    %c0_15 = arith.constant 0 : index
    %c0_16 = arith.constant 0 : index
    %17 = vector.load %arg7[%c0_15, %c0_16] : memref<1x32xf32, #tpu.memory_space<vmem>>, vector<1x32xf32>
    %18 = vector.broadcast %17 : vector<1x32xf32> to vector<152x32xf32>
    %19 = arith.addf %16, %18 : vector<152x32xf32>
    %cst_17 = arith.constant 0.000000e+00 : f32
    %20 = vector.broadcast %cst_17 : f32 to vector<152x32xf32>
    %21 = arith.maximumf %19, %20 : vector<152x32xf32>
    %c0_18 = arith.constant 0 : index
    %c0_19 = arith.constant 0 : index
    %22 = vector.load %arg8[%c0_18, %c0_19] : memref<32x8xf32, #tpu.memory_space<vmem>>, vector<32x8xf32>
    %cst_20 = arith.constant dense<0.000000e+00> : vector<152x8xf32>
    %23 = tpu.matmul %21, %22, %cst_20 {dimension_numbers = #tpu.dot_dimension_numbers<[1], [0], [0], [1], [0, 0, 1, 1], [], []>} : vector<152x32xf32>, vector<32x8xf32>, vector<152x8xf32> -> vector<152x8xf32>
    %c0_21 = arith.constant 0 : index
    %c0_22 = arith.constant 0 : index
    %24 = vector.load %arg9[%c0_21, %c0_22] : memref<1x8xf32, #tpu.memory_space<vmem>>, vector<1x8xf32>
    %25 = vector.broadcast %24 : vector<1x8xf32> to vector<152x8xf32>
    %26 = arith.addf %23, %25 : vector<152x8xf32>
    %27 = math.tanh %26 : vector<152x8xf32>
    %cst_23 = arith.constant 1.000000e+00 : f32
    %28 = vector.broadcast %cst_23 : f32 to vector<152x8xf32>
    %29 = arith.mulf %28, %27 : vector<152x8xf32>
    %c0_24 = arith.constant 0 : index
    %c0_25 = arith.constant 0 : index
    %30 = vector.load %arg10[%c0_24, %c0_25] : memref<152x8xf32, #tpu.memory_space<vmem>>, vector<152x8xf32>
    tpu.vector_store %arg10[%c0_24, %c0_25], %29 {strides = array<i32>} : memref<152x8xf32, #tpu.memory_space<vmem>>, vector<152x8xf32>,
    return
  }
  func.func @transform_0(%arg0: i32) -> (i32, i32) {
    %c0_i32 = arith.constant 0 : i32
    %c0_i32_0 = arith.constant 0 : i32
    return %arg0, %c0_i32 : i32, i32
  }
  func.func @transform_1(%arg0: i32) -> (i32, i32) {
    %c0_i32 = arith.constant 0 : i32
    %c0_i32_0 = arith.constant 0 : i32
    %c0_i32_1 = arith.constant 0 : i32
    return %c0_i32, %c0_i32_0 : i32, i32
  }
  func.func @transform_2(%arg0: i32) -> (i32, i32) {
    %c0_i32 = arith.constant 0 : i32
    %c0_i32_0 = arith.constant 0 : i32
    %c0_i32_1 = arith.constant 0 : i32
    return %c0_i32, %c0_i32_0 : i32, i32
  }
  func.func @transform_3(%arg0: i32) -> (i32, i32) {
    %c0_i32 = arith.constant 0 : i32
    %c0_i32_0 = arith.constant 0 : i32
    %c0_i32_1 = arith.constant 0 : i32
    return %c0_i32, %c0_i32_0 : i32, i32
  }
  func.func @transform_4(%arg0: i32) -> (i32, i32) {
    %c0_i32 = arith.constant 0 : i32
    %c0_i32_0 = arith.constant 0 : i32
    %c0_i32_1 = arith.constant 0 : i32
    return %c0_i32, %c0_i32_0 : i32, i32
  }
  func.func @transform_5(%arg0: i32) -> (i32, i32) {
    %c0_i32 = arith.constant 0 : i32
    %c0_i32_0 = arith.constant 0 : i32
    %c0_i32_1 = arith.constant 0 : i32
    return %c0_i32, %c0_i32_0 : i32, i32
  }
  func.func @transform_6(%arg0: i32) -> (i32, i32) {
    %c0_i32 = arith.constant 0 : i32
    %c0_i32_0 = arith.constant 0 : i32
    %c0_i32_1 = arith.constant 0 : i32
    return %c0_i32, %c0_i32_0 : i32, i32
  }
  func.func @transform_7(%arg0: i32) -> (i32, i32) {
    %c0_i32 = arith.constant 0 : i32
    %c0_i32_0 = arith.constant 0 : i32
    %c0_i32_1 = arith.constant 0 : i32
    return %c0_i32, %c0_i32_0 : i32, i32
  }
  func.func @transform_8(%arg0: i32) -> (i32, i32) {
    %c0_i32 = arith.constant 0 : i32
    %c0_i32_0 = arith.constant 0 : i32
    %c0_i32_1 = arith.constant 0 : i32
    return %c0_i32, %c0_i32_0 : i32, i32
  }
  func.func @transform_9(%arg0: i32) -> (i32, i32) {
    %c0_i32 = arith.constant 0 : i32
    %c0_i32_0 = arith.constant 0 : i32
    return %arg0, %c0_i32 : i32, i32
  }
}

</mosaic_0001>

<bundles_post_ra>
// kernel: tpu_custom_call.1
= control target key start
LH: loop header
LB: loop body
LE: loop exit
PB: predicated region body
PF: predicated region fallthrough
CT: control target
= control target key end

     0   :  { %s1213_s30 = smov 0   ;;  %s1541_s0 = inlined_call_operand.vmem [shape: f32[300,16], index: 0, kind: input, shape index: {}]   ;;  %s1542_s1 = inlined_call_operand.vmem [shape: f32[16,128], index: 1, kind: input, shape index: {}]   ;;  %s1543_s2 = inlined_call_operand.vmem [shape: f32[1,128], index: 2, kind: input, shape index: {}]   ;;  %s1544_s3 = inlined_call_operand.vmem [shape: f32[128,64], index: 3, kind: input, shape index: {}]   ;;  %s1545_s4 = inlined_call_operand.vmem [shape: f32[1,64], index: 4, kind: input, shape index: {}]   ;;  %s1546_s5 = inlined_call_operand.vmem [shape: f32[64,32], index: 5, kind: input, shape index: {}]   ;;  %s1547_s6 = inlined_call_operand.vmem [shape: f32[1,32], index: 6, kind: input, shape index: {}]   ;;  %s1548_s7 = inlined_call_operand.vmem [shape: f32[32,8], index: 7, kind: input, shape index: {}]   ;;  %s1549_s8 = inlined_call_operand.vmem [shape: f32[1,8], index: 8, kind: input, shape index: {}]   ;;  %s1550_s9 = inlined_call_operand.vmem [shape: f32[300,8], index: 9, kind: output, shape index: {}]  }
   0x1 LB: > { %s1023_s10 = sadd.s32 4294967295, %s1161_s30   ;;  %p1027_p0 = scmp.ge.s32.totalorder %s1161_s30, 1  ;;  %s1161_s30 = sphi %s1213_s30, %s19_s30  }
   0x2   : > { %p288_p1 = scmp.lt.s32.totalorder %s1161_s30, 3 }
   0x4   : > { %p289_p2 = pnand %p1027_p0, %p288_p1 }
   0x5   : > { %s324_s15 = smul.u32 (!%p289_p2), 19, %s1023_s10 }
   0x6   : > { %292 = sbr.rel (%p289_p2) target bundleno = 719 (0x2cf), region = 56 }
   0x7   : > { %p325_p3 = scmp.lt.s32.totalorder (!%p289_p2), %s324_s15, 37 }
   0xb   : > { %v356_v0 = vld [vmem:[%s1542_s1 + $0x8] sm:$0xff]  ;;  %v355_v1 = vld [vmem:[%s1542_s1] sm:$0xff]  ;;  %v527_v2 = vld [vmem:[%s1544_s3 + $0x78] sm:$0xff]  ;;  %s1552_s15 = smov (!%p325_p3, %s324_s15), 37  ;;  %vm361_vm0 = vcmask 130048   ;;  %vm637_vm1 = vcmask 523264  }
   0xc   : > { %433 = vmatpush.msra.mxu0 %v356_v0  ;;  %v526_v3 = vld [vmem:[%s1544_s3 + $0x70] sm:$0xff]  ;;  %1089 = vmatpush.msra.mxu1 %v527_v2  ;;  %v525_v4 = vld [vmem:[%s1544_s3 + $0x68] sm:$0xff]  ;;  %v524_v5 = vld [vmem:[%s1544_s3 + $0x60] sm:$0xff]  ;;  %s1028_s24 = sshll.u32 %s1552_s15, 3  ;;  %vm796_vm2 = vcmask 261120   ;;  %vm947_vm3 = vcmask 64512  }
   0xd   : > { %s1247_s27 = scalar_lea.vmem %s1541_s0, %s1028_s24  ;;  %v523_v7 = vld [vmem:[%s1544_s3 + $0x58] sm:$0xff]  ;;  %v522_v10 = vld [vmem:[%s1544_s3 + $0x50] sm:$0xff]  ;;  %v521_v12 = vld [vmem:[%s1544_s3 + $0x48] sm:$0xff]  ;;  %s1478_s13 = scalar_lea.vmem %s1550_s9, %s1028_s24 }
   0xe   : > { %434 = vmatpush.msra.mxu0 %v355_v1  ;;  %1090 = vmatpush.msra.mxu1 %v526_v3  ;;  %v336_v6 = vld [vmem:[%s1247_s27] sm:$0xff]  ;;  %v337_v8 = vld [vmem:[%s1247_s27 + $0x8] sm:$0xff]  ;;  %v338_v9 = vld [vmem:[%s1247_s27 + $0x10] sm:$0xff] }
   0xf   : > { %1030 = vmatmul.msk.f32.vlgmr.msra.gmra.mxu0 %vm361_vm0, %v336_v6  ;;  %v339_v11 = vld [vmem:[%s1247_s27 + $0x18] sm:$0xff]  ;;  %v340_v13 = vld [vmem:[%s1247_s27 + $0x20] sm:$0xff]  ;;  %v341_v15 = vld [vmem:[%s1247_s27 + $0x28] sm:$0xff] }
  0x10   : > { %532 = vmatpush.msrb.mxu0 %v527_v2  ;;  %1091 = vmatpush.msra.mxu1 %v525_v4  ;;  %v520_v14 = vld [vmem:[%s1544_s3 + $0x40] sm:$0xff]  ;;  %v519_v16 = vld [vmem:[%s1544_s3 + $0x38] sm:$0xff]  ;;  %v342_v17 = vld [vmem:[%s1247_s27 + $0x30] sm:$0xff] }
  0x11   : > { %v518_v18 = vld [vmem:[%s1544_s3 + $0x30] sm:$0xff]  ;;  %v343_v19 = vld [vmem:[%s1247_s27 + $0x38] sm:$0xff]  ;;  %v517_v20 = vld [vmem:[%s1544_s3 + $0x28] sm:$0xff] }
  0x12   : > { %533 = vmatpush.msrb.mxu0 %v526_v3  ;;  %1092 = vmatpush.msra.mxu1 %v524_v5  ;;  %v344_v21 = vld [vmem:[%s1247_s27 + $0x40] sm:$0xff]  ;;  %v345_v22 = vld [vmem:[%s1247_s27 + $0x48] sm:$0xff]  ;;  %v346_v24 = vld [vmem:[%s1247_s27 + $0x50] sm:$0xff] }
  0x13   : > { %v516_v23 = vld [vmem:[%s1544_s3 + $0x20] sm:$0xff]  ;;  %v515_v25 = vld [vmem:[%s1544_s3 + $0x18] sm:$0xff]  ;;  %v514_v27 = vld [vmem:[%s1544_s3 + $0x10] sm:$0xff] }
  0x14   : > { %534 = vmatpush.msrb.mxu0 %v525_v4  ;;  %1093 = vmatpush.msra.mxu1 %v523_v7  ;;  %v347_v26 = vld [vmem:[%s1247_s27 + $0x58] sm:$0xff]  ;;  %v348_v28 = vld [vmem:[%s1247_s27 + $0x60] sm:$0xff]  ;;  %v349_v29 = vld [vmem:[%s1247_s27 + $0x68] sm:$0xff] }
  0x15   : > { %v513_v30 = vld [vmem:[%s1544_s3 + $0x8] sm:$0xff]  ;;  %v350_v31 = vld [vmem:[%s1247_s27 + $0x70] sm:$0xff]  ;;  %v512_v32 = vld [vmem:[%s1544_s3] sm:$0xff] }
  0x16   : > { %535 = vmatpush.msrb.mxu0 %v524_v5  ;;  %1094 = vmatpush.msra.mxu1 %v522_v10  ;;  %v351_v33 = vld [vmem:[%s1247_s27 + $0x78] sm:$0xff]  ;;  %v352_v35 = vld [vmem:[%s1247_s27 + $0x80] sm:$0xff]  ;;  %v353_v37 = vld [vmem:[%s1247_s27 + $0x88] sm:$0xff] }
  0x17   : > { %1031 = vmatmul.msk.f32.gmra.mxu0 %vm361_vm0, %v337_v8  ;;  %v1324_v38 = vld [vmem:[%s1543_s2] ss:$0 sm:$0xff]  ;;  %v354_v40 = vld [vmem:[%s1247_s27 + $0x90] sm:$0xff] }
  0x18   : > { %536 = vmatpush.msrb.mxu0 %v523_v7  ;;  %1095 = vmatpush.msra.mxu1 %v521_v12 }
  0x1a   : > { %537 = vmatpush.msrb.mxu0 %v522_v10  ;;  %1096 = vmatpush.msra.mxu1 %v520_v14 }
  0x1c   : > { %538 = vmatpush.msrb.mxu0 %v521_v12  ;;  %1097 = vmatpush.msra.mxu1 %v519_v16 }
  0x1e   : > { %539 = vmatpush.msrb.mxu0 %v520_v14  ;;  %1098 = vmatpush.msra.mxu1 %v518_v18 }
  0x1f   : > { %1032 = vmatmul.msk.f32.gmra.mxu0 %vm361_vm0, %v338_v9 }
  0x20   : > { %540 = vmatpush.msrb.mxu0 %v519_v16  ;;  %1099 = vmatpush.msra.mxu1 %v517_v20  ;;  %v632_v16 = vld [vmem:[%s1546_s5 + $0x38] sm:$0xff] }
  0x21   : > { %703 = vmatpush.msra.mxu2 %v632_v16 }
  0x22   : > { %541 = vmatpush.msrb.mxu0 %v518_v18  ;;  %1100 = vmatpush.msra.mxu1 %v516_v23 }
  0x24   : > { %542 = vmatpush.msrb.mxu0 %v517_v20  ;;  %1101 = vmatpush.msra.mxu1 %v515_v25  ;;  %v630_v20 = vld [vmem:[%s1546_s5 + $0x28] sm:$0xff] }
  0x26   : > { %543 = vmatpush.msrb.mxu0 %v516_v23  ;;  %1102 = vmatpush.msra.mxu1 %v514_v27  ;;  %v628_v23 = vld [vmem:[%s1546_s5 + $0x18] sm:$0xff] }
  0x27   : > { %1033 = vmatmul.msk.f32.gmra.mxu0 %vm361_vm0, %v339_v11 }
  0x28   : > { %544 = vmatpush.msrb.mxu0 %v515_v25  ;;  %1103 = vmatpush.msra.mxu1 %v513_v30 }
  0x2a   : > { %545 = vmatpush.msrb.mxu0 %v514_v27  ;;  %1104 = vmatpush.msra.mxu1 %v512_v32  ;;  %v626_v27 = vld [vmem:[%s1546_s5 + $0x8] sm:$0xff] }
  0x2c   : > { %546 = vmatpush.msrb.mxu0 %v513_v30 }
  0x2e   : > { %547 = vmatpush.msrb.mxu0 %v512_v32 }
  0x2f   : > { %1034 = vmatmul.msk.f32.gmra.mxu0 %vm361_vm0, %v340_v13 }
  0x37   : > { %1035 = vmatmul.msk.f32.gmra.mxu0 %vm361_vm0, %v341_v15 }
  0x3f   : > { %1036 = vmatmul.msk.f32.gmra.mxu0 %vm361_vm0, %v342_v17  ;;  %v631_v17 = vld [vmem:[%s1546_s5 + $0x30] sm:$0xff] }
  0x40   : > { %704 = vmatpush.msra.mxu2 %v631_v17  ;;  %v791_v17 = vld [vmem:[%s1548_s7 + $0x18] sm:$0xff] }
  0x41   : > { %866 = vmatpush.msra.mxu3 %v791_v17 }
  0x42   : > { %705 = vmatpush.msra.mxu2 %v630_v20  ;;  %v789_v20 = vld [vmem:[%s1548_s7 + $0x8] sm:$0xff] }
  0x47   : > { %1037 = vmatmul.msk.f32.gmra.mxu0 %vm361_vm0, %v343_v19 }
  0x4f   : > { %1038 = vmatmul.msk.f32.gmra.mxu0 %vm361_vm0, %v344_v21 }
  0x57   : > { %1039 = vmatmul.msk.f32.gmra.mxu0 %vm361_vm0, %v345_v22  ;;  %v629_v22 = vld [vmem:[%s1546_s5 + $0x20] sm:$0xff] }
  0x58   : > { %706 = vmatpush.msra.mxu2 %v629_v22  ;;  %v788_v22 = vld [vmem:[%s1548_s7] sm:$0xff] }
  0x5a   : > { %707 = vmatpush.msra.mxu2 %v628_v23 }
  0x5f   : > { %1040 = vmatmul.msk.f32.gmra.mxu0 %vm361_vm0, %v346_v24  ;;  %v627_v24 = vld [vmem:[%s1546_s5 + $0x10] sm:$0xff] }
  0x60   : > { %708 = vmatpush.msra.mxu2 %v627_v24 }
  0x62   : > { %709 = vmatpush.msra.mxu2 %v626_v27 }
  0x67   : > { %1041 = vmatmul.msk.f32.gmra.mxu0 %vm361_vm0, %v347_v26 }
  0x6f   : > { %1042 = vmatmul.msk.f32.gmra.mxu0 %vm361_vm0, %v348_v28 }
  0x77   : > { %1043 = vmatmul.msk.f32.gmra.mxu0 %vm361_vm0, %v349_v29  ;;  %v625_v29 = vld [vmem:[%s1546_s5] sm:$0xff] }
  0x78   : > { %710 = vmatpush.msra.mxu2 %v625_v29 }
  0x7f   : > { %1044 = vmatmul.msk.f32.gmra.mxu0 %vm361_vm0, %v350_v31 }
  0x87   : > { %1045 = vmatmul.msk.f32.gmra.mxu0 %vm361_vm0, %v351_v33 }
  0x8c   : > { %v436_v34 = vpop.f32.mrf.mxu0 }
  0x8d   : > { %v437_v43 = vadd.f32 %v1324_v38, %v436_v34 }
  0x8f   : > { %1046 = vmatmul.msk.f32.gmra.mxu0 %vm361_vm0, %v352_v35  ;;  %v493_v45 = vmax.f32 %v437_v43, 0.0 }
  0x94   : > { %v439_v36 = vpop.f32.mrf.mxu0 }
  0x95   : > { %v440_v48 = vadd.f32 %v1324_v38, %v439_v36 }
  0x97   : > { %1047 = vmatmul.msk.f32.gmra.mxu0 %vm361_vm0, %v353_v37  ;;  %v494_v50 = vmax.f32 %v440_v48, 0.0 }
  0x9c   : > { %v442_v39 = vpop.f32.mrf.mxu0 }
  0x9d   : > { %v443_v41 = vadd.f32 %v1324_v38, %v442_v39 }
  0x9f   : > { %v495_v42 = vmax.f32 %v443_v41, 0.0  ;;  %1048 = vmatmul.msk.f32.gmra.mxu0 %vm361_vm0, %v354_v40  ;;  %v1374_v41 = vld [vmem:[%s1545_s4] ss:$0 sm:$0xff] }
  0xa1   : > { %554 = vmatmul.f32.vlgmr.msra.gmra.mxu1 %v495_v42 }
  0xa4   : > { %v445_v44 = vpop.f32.mrf.mxu0 }
  0xa5   : > { %v446_v46 = vadd.f32 %v1324_v38, %v445_v44 }
  0xa7   : > { %v496_v47 = vmax.f32 %v446_v46, 0.0  ;;  %548 = vmatmul.f32.vlgmr.msrb.gmra.mxu0 %v493_v45 }
  0xa9   : > { %557 = vmatmul.f32.gmra.mxu1 %v496_v47 }
  0xac   : > { %v448_v49 = vpop.f32.mrf.mxu0 }
  0xad   : > { %v449_v51 = vadd.f32 %v1324_v38, %v448_v49 }
  0xaf   : > { %v497_v52 = vmax.f32 %v449_v51, 0.0  ;;  %551 = vmatmul.f32.gmra.mxu0 %v494_v50 }
  0xb1   : > { %560 = vmatmul.f32.gmra.mxu1 %v497_v52 }
  0xb4   : > { %v451_v53 = vpop.f32.mrf.mxu0 }
  0xb5   : > { %v452_v54 = vadd.f32 %v1324_v38, %v451_v53 }
  0xb7   : > { %v498_v55 = vmax.f32 %v452_v54, 0.0 }
  0xb9   : > { %563 = vmatmul.f32.gmra.mxu1 %v498_v55 }
  0xbc   : > { %v454_v56 = vpop.f32.mrf.mxu0 }
  0xbd   : > { %v455_v57 = vadd.f32 %v1324_v38, %v454_v56 }
  0xbf   : > { %v499_v58 = vmax.f32 %v455_v57, 0.0 }
  0xc1   : > { %566 = vmatmul.f32.gmra.mxu1 %v499_v58 }
  0xc4   : > { %v457_v59 = vpop.f32.mrf.mxu0 }
  0xc5   : > { %v458_v60 = vadd.f32 %v1324_v38, %v457_v59 }
  0xc7   : > { %v500_v61 = vmax.f32 %v458_v60, 0.0 }
  0xc9   : > { %569 = vmatmul.f32.gmra.mxu1 %v500_v61 }
  0xcc   : > { %v460_v62 = vpop.f32.mrf.mxu0 }
  0xcd   : > { %v461_v63 = vadd.f32 %v1324_v38, %v460_v62 }
  0xcf   : > { %v501_v0 = vmax.f32 %v461_v63, 0.0 }
  0xd1   : > { %572 = vmatmul.f32.gmra.mxu1 %v501_v0 }
  0xd4   : > { %v463_v1 = vpop.f32.mrf.mxu0 }
  0xd5   : > { %v464_v2 = vadd.f32 %v1324_v38, %v463_v1 }
  0xd7   : > { %v502_v3 = vmax.f32 %v464_v2, 0.0 }
  0xd9   : > { %575 = vmatmul.f32.gmra.mxu1 %v502_v3 }
  0xdc   : > { %v466_v4 = vpop.f32.mrf.mxu0 }
  0xdd   : > { %v467_v5 = vadd.f32 %v1324_v38, %v466_v4 }
  0xdf   : > { %v503_v6 = vmax.f32 %v467_v5, 0.0 }
  0xe1   : > { %578 = vmatmul.f32.gmra.mxu1 %v503_v6 }
  0xe4   : > { %v469_v7 = vpop.f32.mrf.mxu0 }
  0xe5   : > { %v470_v8 = vadd.f32 %v1324_v38, %v469_v7 }
  0xe7   : > { %v504_v9 = vmax.f32 %v470_v8, 0.0 }
  0xe9   : > { %581 = vmatmul.f32.gmra.mxu1 %v504_v9 }
  0xec   : > { %v472_v10 = vpop.f32.mrf.mxu0 }
  0xed   : > { %v473_v11 = vadd.f32 %v1324_v38, %v472_v10 }
  0xef   : > { %v505_v12 = vmax.f32 %v473_v11, 0.0 }
  0xf1   : > { %584 = vmatmul.f32.gmra.mxu1 %v505_v12 }
  0xf4   : > { %v475_v13 = vpop.f32.mrf.mxu0 }
  0xf5   : > { %v476_v14 = vadd.f32 %v1324_v38, %v475_v13 }
  0xf7   : > { %v506_v15 = vmax.f32 %v476_v14, 0.0 }
  0xf9   : > { %587 = vmatmul.f32.gmra.mxu1 %v506_v15 }
  0xfc   : > { %v478_v18 = vpop.f32.mrf.mxu0 }
  0xfd   : > { %v479_v19 = vadd.f32 %v1324_v38, %v478_v18 }
  0xff   : > { %v507_v21 = vmax.f32 %v479_v19, 0.0  ;;  %v790_v19 = vld [vmem:[%s1548_s7 + $0x10] sm:$0xff] }
 0x100   : > { %867 = vmatpush.msra.mxu3 %v790_v19 }
 0x101   : > { %590 = vmatmul.f32.gmra.mxu1 %v507_v21 }
 0x102   : > { %868 = vmatpush.msra.mxu3 %v789_v20 }
 0x104   : > { %v481_v25 = vpop.f32.mrf.mxu0  ;;  %869 = vmatpush.msra.mxu3 %v788_v22 }
 0x105   : > { %v482_v26 = vadd.f32 %v1324_v38, %v481_v25 }
 0x107   : > { %v508_v28 = vmax.f32 %v482_v26, 0.0 }
 0x109   : > { %593 = vmatmul.f32.gmra.mxu1 %v508_v28 }
 0x10c   : > { %v484_v30 = vpop.f32.mrf.mxu0 }
 0x10d   : > { %v485_v31 = vadd.f32 %v1324_v38, %v484_v30 }
 0x10f   : > { %v509_v32 = vmax.f32 %v485_v31, 0.0 }
 0x111   : > { %596 = vmatmul.f32.gmra.mxu1 %v509_v32  ;;  %v1425_v32 = vld [vmem:[%s1547_s6] ss:$0 sm:$0xff] }
 0x114   : > { %v487_v33 = vpop.f32.mrf.mxu0 }
 0x115   : > { %v488_v34 = vadd.f32 %v1324_v38, %v487_v33 }
 0x117   : > { %v510_v35 = vmax.f32 %v488_v34, 0.0 }
 0x119   : > { %599 = vmatmul.f32.gmra.mxu1 %v510_v35 }
 0x11c   : > { %v490_v36 = vpop.f32.mrf.mxu0 }
 0x11d   : > { %v491_v37 = vadd.f32 %v1324_v38, %v490_v36 }
 0x11e   : > { %v555_v39 = vpop.f32.mrf.mxu1 }
 0x11f   : > { %v511_v40 = vmax.f32 %v491_v37, 0.0  ;;  %v556_v49 = vadd.f32 %v1374_v41, %v555_v39 }
 0x121   : > { %602 = vmatmul.f32.gmra.mxu1 %v511_v40  ;;  %v608_v51 = vmax.f32 %v556_v49, 0.0 }
 0x124   : > { %v549_v42 = vpop.f32.mrf.mxu0 }
 0x125   : > { %v550_v43 = vadd.f32 %v1374_v41, %v549_v42 }
 0x126   : > { %v558_v44 = vpop.f32.mrf.mxu1 }
 0x127   : > { %v606_v45 = vmax.f32 %v550_v43, 0.0  ;;  %v559_v52 = vadd.f32 %v1374_v41, %v558_v44 }
 0x129   : > { %1049 = vmatmul.msk.f32.vlgmr.msra.gmra.mxu2 %vm637_vm1, %v606_v45  ;;  %v609_v54 = vmax.f32 %v559_v52, 0.0 }
 0x12c   : > { %v552_v46 = vpop.f32.mrf.mxu0 }
 0x12d   : > { %v553_v47 = vadd.f32 %v1374_v41, %v552_v46 }
 0x12e   : > { %v561_v38 = vpop.f32.mrf.mxu1 }
 0x12f   : > { %v607_v48 = vmax.f32 %v553_v47, 0.0  ;;  %v562_v55 = vadd.f32 %v1374_v41, %v561_v38 }
 0x131   : > { %1050 = vmatmul.msk.f32.gmra.mxu2 %vm637_vm1, %v607_v48  ;;  %v610_v57 = vmax.f32 %v562_v55, 0.0 }
 0x136   : > { %v564_v50 = vpop.f32.mrf.mxu1 }
 0x137   : > { %v565_v58 = vadd.f32 %v1374_v41, %v564_v50 }
 0x139   : > { %1051 = vmatmul.msk.f32.gmra.mxu2 %vm637_vm1, %v608_v51  ;;  %v611_v60 = vmax.f32 %v565_v58, 0.0 }
 0x13e   : > { %v567_v53 = vpop.f32.mrf.mxu1 }
 0x13f   : > { %v568_v61 = vadd.f32 %v1374_v41, %v567_v53 }
 0x141   : > { %1052 = vmatmul.msk.f32.gmra.mxu2 %vm637_vm1, %v609_v54  ;;  %v612_v63 = vmax.f32 %v568_v61, 0.0 }
 0x146   : > { %v570_v56 = vpop.f32.mrf.mxu1 }
 0x147   : > { %v571_v0 = vadd.f32 %v1374_v41, %v570_v56 }
 0x149   : > { %1053 = vmatmul.msk.f32.gmra.mxu2 %vm637_vm1, %v610_v57  ;;  %v613_v1 = vmax.f32 %v571_v0, 0.0 }
 0x14e   : > { %v573_v59 = vpop.f32.mrf.mxu1 }
 0x14f   : > { %v574_v3 = vadd.f32 %v1374_v41, %v573_v59 }
 0x151   : > { %1054 = vmatmul.msk.f32.gmra.mxu2 %vm637_vm1, %v611_v60  ;;  %v614_v4 = vmax.f32 %v574_v3, 0.0 }
 0x156   : > { %v576_v62 = vpop.f32.mrf.mxu1 }
 0x157   : > { %v577_v6 = vadd.f32 %v1374_v41, %v576_v62 }
 0x159   : > { %1055 = vmatmul.msk.f32.gmra.mxu2 %vm637_vm1, %v612_v63  ;;  %v615_v7 = vmax.f32 %v577_v6, 0.0 }
 0x15e   : > { %v579_v2 = vpop.f32.mrf.mxu1 }
 0x15f   : > { %v580_v8 = vadd.f32 %v1374_v41, %v579_v2 }
 0x161   : > { %1056 = vmatmul.msk.f32.gmra.mxu2 %vm637_vm1, %v613_v1  ;;  %v616_v10 = vmax.f32 %v580_v8, 0.0 }
 0x166   : > { %v582_v5 = vpop.f32.mrf.mxu1 }
 0x167   : > { %v583_v11 = vadd.f32 %v1374_v41, %v582_v5 }
 0x169   : > { %1057 = vmatmul.msk.f32.gmra.mxu2 %vm637_vm1, %v614_v4  ;;  %v617_v13 = vmax.f32 %v583_v11, 0.0 }
 0x16e   : > { %v585_v9 = vpop.f32.mrf.mxu1 }
 0x16f   : > { %v586_v14 = vadd.f32 %v1374_v41, %v585_v9 }
 0x171   : > { %1058 = vmatmul.msk.f32.gmra.mxu2 %vm637_vm1, %v615_v7  ;;  %v618_v15 = vmax.f32 %v586_v14, 0.0 }
 0x176   : > { %v588_v12 = vpop.f32.mrf.mxu1 }
 0x177   : > { %v589_v18 = vadd.f32 %v1374_v41, %v588_v12 }
 0x179   : > { %1059 = vmatmul.msk.f32.gmra.mxu2 %vm637_vm1, %v616_v10  ;;  %v619_v21 = vmax.f32 %v589_v18, 0.0 }
 0x17e   : > { %v591_v16 = vpop.f32.mrf.mxu1 }
 0x17f   : > { %v592_v24 = vadd.f32 %v1374_v41, %v591_v16 }
 0x181   : > { %1060 = vmatmul.msk.f32.gmra.mxu2 %vm637_vm1, %v617_v13  ;;  %v620_v25 = vmax.f32 %v592_v24, 0.0 }
 0x186   : > { %v594_v23 = vpop.f32.mrf.mxu1 }
 0x187   : > { %v595_v26 = vadd.f32 %v1374_v41, %v594_v23 }
 0x189   : > { %1061 = vmatmul.msk.f32.gmra.mxu2 %vm637_vm1, %v618_v15  ;;  %v621_v28 = vmax.f32 %v595_v26, 0.0 }
 0x18e   : > { %v597_v27 = vpop.f32.mrf.mxu1 }
 0x18f   : > { %v598_v29 = vadd.f32 %v1374_v41, %v597_v27 }
 0x191   : > { %1062 = vmatmul.msk.f32.gmra.mxu2 %vm637_vm1, %v619_v21  ;;  %v622_v31 = vmax.f32 %v598_v29, 0.0 }
 0x196   : > { %v600_v30 = vpop.f32.mrf.mxu1 }
 0x197   : > { %v601_v33 = vadd.f32 %v1374_v41, %v600_v30 }
 0x199   : > { %1063 = vmatmul.msk.f32.gmra.mxu2 %vm637_vm1, %v620_v25  ;;  %v623_v36 = vmax.f32 %v601_v33, 0.0  ;;  %v1468_v25 = vld [vmem:[%s1549_s8] ss:$0 sm:$0xff] }
 0x19e   : > { %v603_v39 = vpop.f32.mrf.mxu1 }
 0x19f   : > { %v604_v40 = vadd.f32 %v1374_v41, %v603_v39 }
 0x1a1   : > { %1064 = vmatmul.msk.f32.gmra.mxu2 %vm637_vm1, %v621_v28  ;;  %v624_v44 = vmax.f32 %v604_v40, 0.0 }
 0x1a9   : > { %1065 = vmatmul.msk.f32.gmra.mxu2 %vm637_vm1, %v622_v31 }
 0x1ac   : > { %v712_v34 = vpop.f32.mrf.mxu2 }
 0x1ad   : > { %v713_v35 = vadd.f32 %v1425_v32, %v712_v34 }
 0x1af   : > { %v769_v37 = vmax.f32 %v713_v35, 0.0 }
 0x1b1   : > { %1066 = vmatmul.msk.f32.gmra.mxu2 %vm637_vm1, %v623_v36  ;;  %1068 = vmatmul.msk.f32.vlgmr.msra.gmra.mxu3 %vm796_vm2, %v769_v37 }
 0x1b4   : > { %v715_v42 = vpop.f32.mrf.mxu2 }
 0x1b5   : > { %v716_v43 = vadd.f32 %v1425_v32, %v715_v42 }
 0x1b7   : > { %v770_v45 = vmax.f32 %v716_v43, 0.0 }
 0x1b9   : > { %1067 = vmatmul.msk.f32.gmra.mxu2 %vm637_vm1, %v624_v44  ;;  %1069 = vmatmul.msk.f32.gmra.mxu3 %vm796_vm2, %v770_v45 }
 0x1bc   : > { %v718_v46 = vpop.f32.mrf.mxu2 }
 0x1bd   : > { %v719_v47 = vadd.f32 %v1425_v32, %v718_v46 }
 0x1bf   : > { %v771_v38 = vmax.f32 %v719_v47, 0.0 }
 0x1c1   : > { %1070 = vmatmul.msk.f32.gmra.mxu3 %vm796_vm2, %v771_v38 }
 0x1c4   : > { %v721_v48 = vpop.f32.mrf.mxu2 }
 0x1c5   : > { %v722_v49 = vadd.f32 %v1425_v32, %v721_v48 }
 0x1c7   : > { %v772_v50 = vmax.f32 %v722_v49, 0.0 }
 0x1c9   : > { %1071 = vmatmul.msk.f32.gmra.mxu3 %vm796_vm2, %v772_v50 }
 0x1cc   : > { %v724_v41 = vpop.f32.mrf.mxu2 }
 0x1cd   : > { %v725_v51 = vadd.f32 %v1425_v32, %v724_v41 }
 0x1cf   : > { %v773_v52 = vmax.f32 %v725_v51, 0.0 }
 0x1d1   : > { %1072 = vmatmul.msk.f32.gmra.mxu3 %vm796_vm2, %v773_v52 }
 0x1d4   : > { %v727_v53 = vpop.f32.mrf.mxu2 }
 0x1d5   : > { %v728_v54 = vadd.f32 %v1425_v32, %v727_v53 }
 0x1d7   : > { %v774_v55 = vmax.f32 %v728_v54, 0.0 }
 0x1d9   : > { %1073 = vmatmul.msk.f32.gmra.mxu3 %vm796_vm2, %v774_v55 }
 0x1dc   : > { %v730_v56 = vpop.f32.mrf.mxu2 }
 0x1dd   : > { %v731_v57 = vadd.f32 %v1425_v32, %v730_v56 }
 0x1df   : > { %v775_v58 = vmax.f32 %v731_v57, 0.0 }
 0x1e1   : > { %1074 = vmatmul.msk.f32.gmra.mxu3 %vm796_vm2, %v775_v58 }
 0x1e4   : > { %v733_v59 = vpop.f32.mrf.mxu2 }
 0x1e5   : > { %v734_v60 = vadd.f32 %v1425_v32, %v733_v59 }
 0x1e7   : > { %v776_v61 = vmax.f32 %v734_v60, 0.0 }
 0x1e9   : > { %1075 = vmatmul.msk.f32.gmra.mxu3 %vm796_vm2, %v776_v61 }
 0x1ec   : > { %v736_v62 = vpop.f32.mrf.mxu2 }
 0x1ed   : > { %v737_v63 = vadd.f32 %v1425_v32, %v736_v62 }
 0x1ef   : > { %v777_v0 = vmax.f32 %v737_v63, 0.0 }
 0x1f1   : > { %1076 = vmatmul.msk.f32.gmra.mxu3 %vm796_vm2, %v777_v0 }
 0x1f4   : > { %v739_v1 = vpop.f32.mrf.mxu2 }
 0x1f5   : > { %v740_v2 = vadd.f32 %v1425_v32, %v739_v1 }
 0x1f7   : > { %v778_v3 = vmax.f32 %v740_v2, 0.0 }
 0x1f9   : > { %1077 = vmatmul.msk.f32.gmra.mxu3 %vm796_vm2, %v778_v3 }
 0x1fc   : > { %v742_v4 = vpop.f32.mrf.mxu2 }
 0x1fd   : > { %v743_v5 = vadd.f32 %v1425_v32, %v742_v4 }
 0x1ff   : > { %v779_v6 = vmax.f32 %v743_v5, 0.0 }
 0x201   : > { %1078 = vmatmul.msk.f32.gmra.mxu3 %vm796_vm2, %v779_v6 }
 0x204   : > { %v745_v7 = vpop.f32.mrf.mxu2 }
 0x205   : > { %v746_v8 = vadd.f32 %v1425_v32, %v745_v7 }
 0x207   : > { %v780_v9 = vmax.f32 %v746_v8, 0.0 }
 0x209   : > { %1079 = vmatmul.msk.f32.gmra.mxu3 %vm796_vm2, %v780_v9 }
 0x20c   : > { %v748_v10 = vpop.f32.mrf.mxu2 }
 0x20d   : > { %v749_v11 = vadd.f32 %v1425_v32, %v748_v10 }
 0x20f   : > { %v781_v12 = vmax.f32 %v749_v11, 0.0 }
 0x211   : > { %1080 = vmatmul.msk.f32.gmra.mxu3 %vm796_vm2, %v781_v12 }
 0x214   : > { %v751_v13 = vpop.f32.mrf.mxu2 }
 0x215   : > { %v752_v14 = vadd.f32 %v1425_v32, %v751_v13 }
 0x217   : > { %v782_v15 = vmax.f32 %v752_v14, 0.0 }
 0x219   : > { %1081 = vmatmul.msk.f32.gmra.mxu3 %vm796_vm2, %v782_v15 }
 0x21c   : > { %v754_v16 = vpop.f32.mrf.mxu2 }
 0x21d   : > { %v755_v17 = vadd.f32 %v1425_v32, %v754_v16 }
 0x21f   : > { %v783_v18 = vmax.f32 %v755_v17, 0.0 }
 0x221   : > { %1082 = vmatmul.msk.f32.gmra.mxu3 %vm796_vm2, %v783_v18 }
 0x224   : > { %v757_v19 = vpop.f32.mrf.mxu2 }
 0x225   : > { %v758_v20 = vadd.f32 %v1425_v32, %v757_v19 }
 0x227   : > { %v784_v21 = vmax.f32 %v758_v20, 0.0 }
 0x229   : > { %1083 = vmatmul.msk.f32.gmra.mxu3 %vm796_vm2, %v784_v21 }
 0x22c   : > { %v760_v22 = vpop.f32.mrf.mxu2 }
 0x22d   : > { %v761_v23 = vadd.f32 %v1425_v32, %v760_v22 }
 0x22f   : > { %v785_v24 = vmax.f32 %v761_v23, 0.0 }
 0x231   : > { %1084 = vmatmul.msk.f32.gmra.mxu3 %vm796_vm2, %v785_v24 }
 0x234   : > { %v763_v26 = vpop.f32.mrf.mxu2  ;;  %v871_v27 = vpop.f32.mrf.mxu3 }
 0x235   : > { %v764_v28 = vadd.f32 %v1425_v32, %v763_v26  ;;  %v872_v29 = vadd.f32 %v1468_v25, %v871_v27 }
 0x237   : > { %v786_v30 = vmax.f32 %v764_v28, 0.0  ;;  %1117 = vtanh.f32 %v872_v29 }
 0x239   : > { %1085 = vmatmul.msk.f32.gmra.mxu3 %vm796_vm2, %v786_v30 }
 0x23c   : > { %v766_v31 = vpop.f32.mrf.mxu2  ;;  %v874_v33 = vpop.f32.mrf.mxu3 }
 0x23d   : > { %v1118_v34 = vpop.eup %1117  ;;  %v767_v35 = vadd.f32 %v1425_v32, %v766_v31  ;;  %v875_v36 = vadd.f32 %v1468_v25, %v874_v33 }
 0x23e   : > { %948 = vst.msk [vmem:[%s1478_s13] sm:$0xff] %vm947_vm3, %v1118_v34 }
 0x23f   : > { %v787_v37 = vmax.f32 %v767_v35, 0.0  ;;  %1119 = vtanh.f32 %v875_v36 }
 0x241   : > { %1086 = vmatmul.msk.f32.gmra.mxu3 %vm796_vm2, %v787_v37 }
 0x244   : > { %v877_v39 = vpop.f32.mrf.mxu3 }
 0x245   : > { %v1120_v40 = vpop.eup %1119  ;;  %v878_v42 = vadd.f32 %v1468_v25, %v877_v39 }
 0x246   : > { %949 = vst.msk [vmem:[%s1478_s13 + $0x8] sm:$0xff] %vm947_vm3, %v1120_v40 }
 0x247   : > { %1121 = vtanh.f32 %v878_v42 }
 0x24c   : > { %v880_v43 = vpop.f32.mrf.mxu3 }
 0x24d   : > { %v1122_v44 = vpop.eup %1121  ;;  %v881_v32 = vadd.f32 %v1468_v25, %v880_v43 }
 0x24e   : > { %950 = vst.msk [vmem:[%s1478_s13 + $0x10] sm:$0xff] %vm947_vm3, %v1122_v44 }
 0x24f   : > { %1123 = vtanh.f32 %v881_v32 }
 0x254   : > { %v883_v45 = vpop.f32.mrf.mxu3 }
 0x255   : > { %v1124_v46 = vpop.eup %1123  ;;  %v884_v47 = vadd.f32 %v1468_v25, %v883_v45 }
 0x256   : > { %951 = vst.msk [vmem:[%s1478_s13 + $0x18] sm:$0xff] %vm947_vm3, %v1124_v46 }
 0x257   : > { %1125 = vtanh.f32 %v884_v47 }
 0x25c   : > { %v886_v38 = vpop.f32.mrf.mxu3 }
 0x25d   : > { %v1126_v48 = vpop.eup %1125  ;;  %v887_v49 = vadd.f32 %v1468_v25, %v886_v38 }
 0x25e   : > { %952 = vst.msk [vmem:[%s1478_s13 + $0x20] sm:$0xff] %vm947_vm3, %v1126_v48 }
 0x25f   : > { %1127 = vtanh.f32 %v887_v49 }
 0x264   : > { %v889_v50 = vpop.f32.mrf.mxu3 }
 0x265   : > { %v1128_v41 = vpop.eup %1127  ;;  %v890_v51 = vadd.f32 %v1468_v25, %v889_v50 }
 0x266   : > { %953 = vst.msk [vmem:[%s1478_s13 + $0x28] sm:$0xff] %vm947_vm3, %v1128_v41 }
 0x267   : > { %1129 = vtanh.f32 %v890_v51 }
 0x26c   : > { %v892_v52 = vpop.f32.mrf.mxu3 }
 0x26d   : > { %v1130_v53 = vpop.eup %1129  ;;  %v893_v54 = vadd.f32 %v1468_v25, %v892_v52 }
 0x26e   : > { %954 = vst.msk [vmem:[%s1478_s13 + $0x30] sm:$0xff] %vm947_vm3, %v1130_v53 }
 0x26f   : > { %1131 = vtanh.f32 %v893_v54 }
 0x274   : > { %v895_v55 = vpop.f32.mrf.mxu3 }
 0x275   : > { %v1132_v56 = vpop.eup %1131  ;;  %v896_v57 = vadd.f32 %v1468_v25, %v895_v55 }
 0x276   : > { %955 = vst.msk [vmem:[%s1478_s13 + $0x38] sm:$0xff] %vm947_vm3, %v1132_v56 }
 0x277   : > { %1133 = vtanh.f32 %v896_v57 }
 0x27c   : > { %v898_v58 = vpop.f32.mrf.mxu3 }
 0x27d   : > { %v1134_v59 = vpop.eup %1133  ;;  %v899_v60 = vadd.f32 %v1468_v25, %v898_v58 }
 0x27e   : > { %956 = vst.msk [vmem:[%s1478_s13 + $0x40] sm:$0xff] %vm947_vm3, %v1134_v59 }
 0x27f   : > { %1135 = vtanh.f32 %v899_v60 }
 0x284   : > { %v901_v61 = vpop.f32.mrf.mxu3 }
 0x285   : > { %v1136_v62 = vpop.eup %1135  ;;  %v902_v63 = vadd.f32 %v1468_v25, %v901_v61 }
 0x286   : > { %957 = vst.msk [vmem:[%s1478_s13 + $0x48] sm:$0xff] %vm947_vm3, %v1136_v62 }
 0x287   : > { %1137 = vtanh.f32 %v902_v63 }
 0x28c   : > { %v904_v0 = vpop.f32.mrf.mxu3 }
 0x28d   : > { %v1138_v1 = vpop.eup %1137  ;;  %v905_v2 = vadd.f32 %v1468_v25, %v904_v0 }
 0x28e   : > { %958 = vst.msk [vmem:[%s1478_s13 + $0x50] sm:$0xff] %vm947_vm3, %v1138_v1 }
 0x28f   : > { %1139 = vtanh.f32 %v905_v2 }
 0x294   : > { %v907_v3 = vpop.f32.mrf.mxu3 }
 0x295   : > { %v1140_v4 = vpop.eup %1139  ;;  %v908_v5 = vadd.f32 %v1468_v25, %v907_v3 }
 0x296   : > { %959 = vst.msk [vmem:[%s1478_s13 + $0x58] sm:$0xff] %vm947_vm3, %v1140_v4 }
 0x297   : > { %1141 = vtanh.f32 %v908_v5 }
 0x29c   : > { %v910_v6 = vpop.f32.mrf.mxu3 }
 0x29d   : > { %v1142_v7 = vpop.eup %1141  ;;  %v911_v8 = vadd.f32 %v1468_v25, %v910_v6 }
 0x29e   : > { %960 = vst.msk [vmem:[%s1478_s13 + $0x60] sm:$0xff] %vm947_vm3, %v1142_v7 }
 0x29f   : > { %1143 = vtanh.f32 %v911_v8 }
 0x2a4   : > { %v913_v9 = vpop.f32.mrf.mxu3 }
 0x2a5   : > { %v1144_v10 = vpop.eup %1143  ;;  %v914_v11 = vadd.f32 %v1468_v25, %v913_v9 }
 0x2a6   : > { %961 = vst.msk [vmem:[%s1478_s13 + $0x68] sm:$0xff] %vm947_vm3, %v1144_v10 }
 0x2a7   : > { %1145 = vtanh.f32 %v914_v11 }
 0x2ac   : > { %v916_v12 = vpop.f32.mrf.mxu3 }
 0x2ad   : > { %v1146_v13 = vpop.eup %1145  ;;  %v917_v14 = vadd.f32 %v1468_v25, %v916_v12 }
 0x2ae   : > { %962 = vst.msk [vmem:[%s1478_s13 + $0x70] sm:$0xff] %vm947_vm3, %v1146_v13 }
 0x2af   : > { %1147 = vtanh.f32 %v917_v14 }
 0x2b4   : > { %v919_v15 = vpop.f32.mrf.mxu3 }
 0x2b5   : > { %v1148_v16 = vpop.eup %1147  ;;  %v920_v17 = vadd.f32 %v1468_v25, %v919_v15 }
 0x2b6   : > { %963 = vst.msk [vmem:[%s1478_s13 + $0x78] sm:$0xff] %vm947_vm3, %v1148_v16 }
 0x2b7   : > { %1149 = vtanh.f32 %v920_v17 }
 0x2bc   : > { %v922_v18 = vpop.f32.mrf.mxu3 }
 0x2bd   : > { %v1150_v19 = vpop.eup %1149  ;;  %v923_v20 = vadd.f32 %v1468_v25, %v922_v18 }
 0x2be   : > { %964 = vst.msk [vmem:[%s1478_s13 + $0x80] sm:$0xff] %vm947_vm3, %v1150_v19 }
 0x2bf   : > { %1151 = vtanh.f32 %v923_v20 }
 0x2c4   : > { %v925_v21 = vpop.f32.mrf.mxu3 }
 0x2c5   : > { %v1152_v22 = vpop.eup %1151  ;;  %v926_v23 = vadd.f32 %v1468_v25, %v925_v21 }
 0x2c6   : > { %965 = vst.msk [vmem:[%s1478_s13 + $0x88] sm:$0xff] %vm947_vm3, %v1152_v22 }
 0x2c7   : > { %1153 = vtanh.f32 %v926_v23 }
 0x2cd   : > { %v1154_v24 = vpop.eup %1153 }
 0x2ce   : > { %966 = vst.msk [vmem:[%s1478_s13 + $0x90] sm:$0xff] %vm947_vm3, %v1154_v24 }
 0x2cf PF: > { %s19_s30 = sadd.s32 1, %s1161_s30  }
 0x2d0   : > { %p16_p4 = scmp.ge.s32.totalorder %s19_s30, 4  }
 0x2d2   :  { %18 = sbr.rel (!%p16_p4) target bundleno = 1 (0x1), region = 86 }

</bundles_post_ra>
